<compile_context>
chip_gen: v7x
topology: tpu7x:2x2x1
jax: 0.10.0
libtpu: 0.0.40
codegen_flags: <defaults>
</compile_context>

<pallas_src>
from functools import partial

import jax
import jax.numpy as jnp
import numpy as np
from jax.experimental import pallas as pl
from jax.experimental.pallas import tpu as pltpu


# ----------------------------------------------------------------------------
# Kernel: one grid step = one independent (N, D) set of cell embeddings
# ----------------------------------------------------------------------------
def attention_pooling_kernel(x_ref, wq_ref, bq_ref, wk_ref, wv_ref, bv_ref,
                             out_ref, *, scale):
    x = x_ref[0]                                                       # (N, D) bf16
    n = x.shape[0]

    # Values projection: the only full-size matmul left (bf16 MXU, f32 accumulate).
    v = jnp.dot(x, wv_ref[...], preferred_element_type=jnp.float32) + bv_ref[...]  # (N, D)

    # Column mean on the MXU: (1, N) @ (N, D); exact 1/N applied in f32.
    ones = jnp.full((1, n), 1.0, dtype=x.dtype)
    xbar = jnp.dot(ones, x, preferred_element_type=jnp.float32) * (1.0 / n)        # (1, D)

    # Mean query (mean folded before the projection); softmax temperature folded in.
    qbar = (jnp.dot(xbar, wq_ref[...].astype(jnp.float32),
                    preferred_element_type=jnp.float32) + bq_ref[...]) * scale     # (1, H)

    # Keys projection eliminated: s_j = qbar.(x_j Wk + bk) = x_j.(Wk qbar^T) + const;
    # the constant (qbar.bk) cancels inside the softmax, so bk is never needed.
    c = jax.lax.dot_general(qbar, wk_ref[...].astype(jnp.float32),
                            (((1,), (1,)), ((), ())),
                            preferred_element_type=jnp.float32)                    # (1, D)
    s = jax.lax.dot_general(x.astype(jnp.float32), c,
                            (((1,), (1,)), ((), ())),
                            preferred_element_type=jnp.float32)                    # (N, 1)

    # Numerically stable softmax over the N cells (tiny sublane reductions).
    s = s - jnp.max(s, axis=0, keepdims=True)
    p = jnp.exp(s)                                                                 # (N, 1)
    denom = jnp.sum(p, axis=0, keepdims=True)                                      # (1, 1)

    # pooled = sum_j softmax(s)_j * v_j ; normalize once with an exact divide.
    pooled = jnp.sum(p * v, axis=0, keepdims=True)                                 # (1, D)
    out_ref[0] = pooled / denom


# ----------------------------------------------------------------------------
# Wrappers
# ----------------------------------------------------------------------------
def attention_pooling_batched(xs, wq, bq, wk, bk, wv, bv):
    """Pooled embeddings for a batch of independent cell sets.

    xs: (B, N, D); wq/wk: (D, H), wv: (D, D) stored pre-transposed (x @ W layout);
    bq/bk: (H,), bv: (D,).  Returns (B, 1, D) float32.
    """
    del bk  # exactly cancels inside the softmax (shift invariance); see kernel comment.
    B, N, D = xs.shape
    H = wq.shape[1]
    scale = 1.0 / (H ** 0.5)

    cdt = jnp.bfloat16  # MXU/DMA dtype for the big operands; biases stay f32.
    args = (xs.astype(cdt),
            wq.astype(cdt), bq.reshape(1, H).astype(jnp.float32),
            wk.astype(cdt),
            wv.astype(cdt), bv.reshape(1, D).astype(jnp.float32))

    const = lambda b: (0, 0)  # weights/biases: same block every step -> stay VMEM-resident
    in_specs = [
        pl.BlockSpec((1, N, D), lambda b: (b, 0, 0)),   # stream one cell set per grid step
        pl.BlockSpec((D, H), const),
        pl.BlockSpec((1, H), const),
        pl.BlockSpec((D, H), const),
        pl.BlockSpec((D, D), const),
        pl.BlockSpec((1, D), const),
    ]
    out_specs = pl.BlockSpec((1, 1, D), lambda b: (b, 0, 0))

    return pl.pallas_call(
        partial(attention_pooling_kernel, scale=scale),
        out_shape=jax.ShapeDtypeStruct((B, 1, D), jnp.float32),
        grid=(B,),
        in_specs=in_specs,
        out_specs=out_specs,
        compiler_params=pltpu.CompilerParams(
            dimension_semantics=("parallel",),          # v7x: shard batch over both TCs
            vmem_limit_bytes=64 * 1024 * 1024),
    )(*args)


def attention_pooling(cell_embeddings, wq, bq, wk, bk, wv, bv):
    """Single-set forward matching the PyTorch module: (N, D) -> (1, D)."""
    return attention_pooling_batched(cell_embeddings[None], wq, bq, wk, bk, wv, bv)[0]


# ----------------------------------------------------------------------------
# Pure-JAX reference (literal translation of the PyTorch forward)
# ----------------------------------------------------------------------------
def attention_pooling_ref(x, wq, bq, wk, bk, wv, bv):
    q = x @ wq + bq
    k = x @ wk + bk
    v = x @ wv + bv
    scores = (q @ k.T) / (k.shape[-1] ** 0.5)
    weights = jax.nn.softmax(jnp.mean(scores, axis=0), axis=0)
    return jnp.sum(v * weights[:, None], axis=0)[None, :]


if __name__ == "__main__":
    N, DIM, REDUCTION = 8, 256, 2
    HIDDEN = max(DIM // REDUCTION, 128)                 # 128

    key = jax.random.PRNGKey(0)
    kx, kq, kk, kv = jax.random.split(key, 4)

    def linear_init(k, fan_in, fan_out):
        # nn.Linear default init; weight stored pre-transposed as (in, out).
        bound = 1.0 / (fan_in ** 0.5)
        kw, kb = jax.random.split(k)
        w = jax.random.uniform(kw, (fan_in, fan_out), jnp.float32, -bound, bound)
        b = jax.random.uniform(kb, (fan_out,), jnp.float32, -bound, bound)
        return w, b

    x = jax.random.normal(kx, (N, DIM), jnp.float32)
    wq, bq = linear_init(kq, DIM, HIDDEN)
    wk, bk = linear_init(kk, DIM, HIDDEN)
    wv, bv = linear_init(kv, DIM, DIM)

    out = attention_pooling(x, wq, bq, wk, bk, wv, bv)
    jax.block_until_ready(out)
    assert out.shape == (1, DIM)

    # (1) Kernel-math check: reference evaluated on the same bf16-rounded operands the
    #     kernel consumes (biases stay f32) -> only f32 reassociation differences remain.
    rd = lambda a: a.astype(jnp.bfloat16).astype(jnp.float32)
    ref_q = attention_pooling_ref(rd(x), rd(wq), bq, rd(wk), bk, rd(wv), bv)
    np.testing.assert_allclose(np.asarray(out), np.asarray(ref_q), rtol=2e-3, atol=1e-4)

    # (2) End-to-end check against the pure-f32 reference; tolerance bounds the
    #     intentional bf16 operand quantization (the only approximation in the kernel).
    ref = attention_pooling_ref(x, wq, bq, wk, bk, wv, bv)
    np.testing.assert_allclose(np.asarray(out), np.asarray(ref), rtol=5e-2, atol=2e-2)

    print("KERNEL_OK")
</pallas_src>

<mosaic_0001>
module attributes {stable_mosaic.version = 11 : i64} {
  func.func @attention_pooling_kernel(%arg0: i32, %arg1: memref<1x8x256xbf16, #tpu.memory_space<vmem>>, %arg2: memref<256x128xbf16, #tpu.memory_space<vmem>>, %arg3: memref<1x128xf32, #tpu.memory_space<vmem>>, %arg4: memref<256x128xbf16, #tpu.memory_space<vmem>>, %arg5: memref<256x256xbf16, #tpu.memory_space<vmem>>, %arg6: memref<1x256xf32, #tpu.memory_space<vmem>>, %arg7: memref<1x1x256xf32, #tpu.memory_space<vmem>>) attributes {dimension_semantics = [#tpu.dimension_semantics<parallel>], iteration_bounds = array<i64: 1>, scalar_prefetch = 0 : i64, scratch_operands = 0 : i64, tpu.core_type = #tpu.core_type<tc>, window_params = [{transform_indices = @transform_0, window_bounds = array<i64: 1, 8, 256>}, {pipeline_mode = #tpu.pipeline_mode<synchronous>, transform_indices = @transform_1, window_bounds = array<i64: 256, 128>}, {pipeline_mode = #tpu.pipeline_mode<synchronous>, transform_indices = @transform_2, window_bounds = array<i64: 1, 128>}, {pipeline_mode = #tpu.pipeline_mode<synchronous>, transform_indices = @transform_3, window_bounds = array<i64: 256, 128>}, {pipeline_mode = #tpu.pipeline_mode<synchronous>, transform_indices = @transform_4, window_bounds = array<i64: 256, 256>}, {pipeline_mode = #tpu.pipeline_mode<synchronous>, transform_indices = @transform_5, window_bounds = array<i64: 1, 256>}, {transform_indices = @transform_6, window_bounds = array<i64: 1, 1, 256>}]} {
    %c0 = arith.constant 0 : index
    %c0_0 = arith.constant 0 : index
    %c0_1 = arith.constant 0 : index
    %0 = vector.load %arg1[%c0, %c0_0, %c0_1] : memref<1x8x256xbf16, #tpu.memory_space<vmem>>, vector<1x8x256xbf16>
    %1 = vector.shape_cast %0 : vector<1x8x256xbf16> to vector<8x256xbf16>
    %c0_2 = arith.constant 0 : index
    %c0_3 = arith.constant 0 : index
    %2 = vector.load %arg5[%c0_2, %c0_3] : memref<256x256xbf16, #tpu.memory_space<vmem>>, vector<256x256xbf16>
    %cst = arith.constant dense<0.000000e+00> : vector<8x256xf32>
    %3 = tpu.matmul %1, %2, %cst {dimension_numbers = #tpu.dot_dimension_numbers<[1], [0], [0], [1], [0, 0, 1, 1], [], []>} : vector<8x256xbf16>, vector<256x256xbf16>, vector<8x256xf32> -> vector<8x256xf32>
    %c0_4 = arith.constant 0 : index
    %c0_5 = arith.constant 0 : index
    %4 = vector.load %arg6[%c0_4, %c0_5] : memref<1x256xf32, #tpu.memory_space<vmem>>, vector<1x256xf32>
    %5 = vector.broadcast %4 : vector<1x256xf32> to vector<8x256xf32>
    %6 = arith.addf %3, %5 : vector<8x256xf32>
    %cst_6 = arith.constant 1.000000e+00 : bf16
    %7 = vector.broadcast %cst_6 : bf16 to vector<1x8xbf16>
    %cst_7 = arith.constant dense<0.000000e+00> : vector<1x256xf32>
    %8 = tpu.matmul %7, %1, %cst_7 {dimension_numbers = #tpu.dot_dimension_numbers<[1], [0], [0], [1], [0, 0, 1, 1], [], []>} : vector<1x8xbf16>, vector<8x256xbf16>, vector<1x256xf32> -> vector<1x256xf32>
    %cst_8 = arith.constant 1.250000e-01 : f32
    %9 = vector.broadcast %cst_8 : f32 to vector<1x256xf32>
    %10 = arith.mulf %8, %9 : vector<1x256xf32>
    %c0_9 = arith.constant 0 : index
    %c0_10 = arith.constant 0 : index
    %11 = vector.load %arg2[%c0_9, %c0_10] : memref<256x128xbf16, #tpu.memory_space<vmem>>, vector<256x128xbf16>
    %12 = arith.extf %11 : vector<256x128xbf16> to vector<256x128xf32>
    %cst_11 = arith.constant dense<0.000000e+00> : vector<1x128xf32>
    %13 = tpu.matmul %10, %12, %cst_11 {dimension_numbers = #tpu.dot_dimension_numbers<[1], [0], [0], [1], [0, 0, 1, 1], [], []>} : vector<1x256xf32>, vector<256x128xf32>, vector<1x128xf32> -> vector<1x128xf32>
    %c0_12 = arith.constant 0 : index
    %c0_13 = arith.constant 0 : index
    %14 = vector.load %arg3[%c0_12, %c0_13] : memref<1x128xf32, #tpu.memory_space<vmem>>, vector<1x128xf32>
    %15 = arith.addf %13, %14 : vector<1x128xf32>
    %cst_14 = arith.constant 0.0883883461 : f32
    %16 = vector.broadcast %cst_14 : f32 to vector<1x128xf32>
    %17 = arith.mulf %15, %16 : vector<1x128xf32>
    %c0_15 = arith.constant 0 : index
    %c0_16 = arith.constant 0 : index
    %18 = vector.load %arg4[%c0_15, %c0_16] : memref<256x128xbf16, #tpu.memory_space<vmem>>, vector<256x128xbf16>
    %19 = arith.extf %18 : vector<256x128xbf16> to vector<256x128xf32>
    %cst_17 = arith.constant dense<0.000000e+00> : vector<1x256xf32>
    %20 = tpu.matmul %17, %19, %cst_17 {dimension_numbers = #tpu.dot_dimension_numbers<[1], [1], [0], [0], [0, 0, 1, 0], [], []>} : vector<1x128xf32>, vector<256x128xf32>, vector<1x256xf32> -> vector<1x256xf32>
    %21 = arith.extf %1 : vector<8x256xbf16> to vector<8x256xf32>
    %cst_18 = arith.constant dense<0.000000e+00> : vector<8x1xf32>
    %22 = tpu.matmul %21, %20, %cst_18 {dimension_numbers = #tpu.dot_dimension_numbers<[1], [1], [0], [0], [0, 0, 1, 0], [], []>} : vector<8x256xf32>, vector<1x256xf32>, vector<8x1xf32> -> vector<8x1xf32>
    %cst_19 = arith.constant dense<0xFF800000> : vector<1xf32>
    %23 = vector.multi_reduction <maximumf>, %22, %cst_19 [0] : vector<8x1xf32> to vector<1xf32>
    %24 = vector.shape_cast %23 : vector<1xf32> to vector<1x1xf32>
    %25 = vector.broadcast %24 : vector<1x1xf32> to vector<8x1xf32>
    %26 = arith.subf %22, %25 : vector<8x1xf32>
    %27 = math.exp %26 : vector<8x1xf32>
    %cst_20 = arith.constant dense<0.000000e+00> : vector<1xf32>
    %28 = vector.multi_reduction <add>, %27, %cst_20 [0] : vector<8x1xf32> to vector<1xf32>
    %29 = vector.shape_cast %28 : vector<1xf32> to vector<1x1xf32>
    %30 = vector.broadcast %27 : vector<8x1xf32> to vector<8x256xf32>
    %31 = arith.mulf %30, %6 : vector<8x256xf32>
    %cst_21 = arith.constant dense<0.000000e+00> : vector<256xf32>
    %32 = vector.multi_reduction <add>, %31, %cst_21 [0] : vector<8x256xf32> to vector<256xf32>
    %33 = vector.shape_cast %32 : vector<256xf32> to vector<1x256xf32>
    %34 = vector.broadcast %29 : vector<1x1xf32> to vector<1x256xf32>
    %35 = arith.divf %33, %34 : vector<1x256xf32>
    %c0_22 = arith.constant 0 : index
    %c0_23 = arith.constant 0 : index
    %c0_24 = arith.constant 0 : index
    %36 = vector.load %arg7[%c0_22, %c0_23, %c0_24] : memref<1x1x256xf32, #tpu.memory_space<vmem>>, vector<1x1x256xf32>
    %37 = vector.shape_cast %36 : vector<1x1x256xf32> to vector<1x256xf32>
    %38 = vector.shape_cast %35 : vector<1x256xf32> to vector<1x1x256xf32>
    tpu.vector_store %arg7[%c0_22, %c0_23, %c0_24], %38 {strides = array<i32>} : memref<1x1x256xf32, #tpu.memory_space<vmem>>, vector<1x1x256xf32>,
    return
  }
  func.func @transform_0(%arg0: i32) -> (i32, i32, i32) {
    %c0_i32 = arith.constant 0 : i32
    %c0_i32_0 = arith.constant 0 : i32
    %c0_i32_1 = arith.constant 0 : i32
    return %arg0, %c0_i32, %c0_i32_0 : i32, i32, i32
  }
  func.func @transform_1(%arg0: i32) -> (i32, i32) {
    %c0_i32 = arith.constant 0 : i32
    %c0_i32_0 = arith.constant 0 : i32
    %c0_i32_1 = arith.constant 0 : i32
    return %c0_i32, %c0_i32_0 : i32, i32
  }
  func.func @transform_2(%arg0: i32) -> (i32, i32) {
    %c0_i32 = arith.constant 0 : i32
    %c0_i32_0 = arith.constant 0 : i32
    %c0_i32_1 = arith.constant 0 : i32
    return %c0_i32, %c0_i32_0 : i32, i32
  }
  func.func @transform_3(%arg0: i32) -> (i32, i32) {
    %c0_i32 = arith.constant 0 : i32
    %c0_i32_0 = arith.constant 0 : i32
    %c0_i32_1 = arith.constant 0 : i32
    return %c0_i32, %c0_i32_0 : i32, i32
  }
  func.func @transform_4(%arg0: i32) -> (i32, i32) {
    %c0_i32 = arith.constant 0 : i32
    %c0_i32_0 = arith.constant 0 : i32
    %c0_i32_1 = arith.constant 0 : i32
    return %c0_i32, %c0_i32_0 : i32, i32
  }
  func.func @transform_5(%arg0: i32) -> (i32, i32) {
    %c0_i32 = arith.constant 0 : i32
    %c0_i32_0 = arith.constant 0 : i32
    %c0_i32_1 = arith.constant 0 : i32
    return %c0_i32, %c0_i32_0 : i32, i32
  }
  func.func @transform_6(%arg0: i32) -> (i32, i32, i32) {
    %c0_i32 = arith.constant 0 : i32
    %c0_i32_0 = arith.constant 0 : i32
    %c0_i32_1 = arith.constant 0 : i32
    return %arg0, %c0_i32, %c0_i32_0 : i32, i32, i32
  }
}

</mosaic_0001>

<bundles_post_ra>
// kernel: tpu_custom_call.1
= control target key start
LH: loop header
LB: loop body
LE: loop exit
PB: predicated region body
PF: predicated region fallthrough
CT: control target
= control target key end

     0   :  { %11 = vsyncpa [#allocation3], 0  ;;  %s1478_s0 = inlined_call_operand.hbm [shape: bf16[1,8,256], index: 0, kind: input, shape index: {}]   ;;  %s1479_s1 = inlined_call_operand.hbm [shape: bf16[256,128], index: 1, kind: input, shape index: {}]   ;;  %s1480_s2 = inlined_call_operand.hbm [shape: f32[1,128], index: 2, kind: input, shape index: {}]   ;;  %s1481_s3 = inlined_call_operand.hbm [shape: bf16[256,128], index: 3, kind: input, shape index: {}]   ;;  %s1482_s4 = inlined_call_operand.hbm [shape: bf16[256,256], index: 4, kind: input, shape index: {}]   ;;  %s1483_s5 = inlined_call_operand.hbm [shape: f32[1,256], index: 5, kind: input, shape index: {}]   ;;  %s1484_s6 = inlined_call_operand.hbm [shape: f32[1,1,256], index: 6, kind: output, shape index: {}]  }
   0x1   :  { %12 = vsyncpa [#allocation6], 0 }
   0x2   :  { %13 = vsyncpa [#allocation9], 0 }
   0x3   :  { %14 = vsyncpa [#allocation12], 0 }
   0x4   :  { %15 = vsyncpa [#allocation4], 0  ;;  %s1327_s21 = smov [#allocation5]   ;;  %s1163_s25 = scalar_lea.hbm %s1479_s1, 2048 }
   0x5   :  { %s31_s22 = sshll.u32 %s1327_s21, 4  ;;  %p1164_p0 = scmp.ne.s32.totalorder %s1479_s1, %s1163_s25  ;;  %s32_s22 = int_to_ptr.vmem [resolvable:$true] %s31_s22 }
   0x6   :  { %p1167_p1 = scmp.lt.u32.totalorder %s1163_s25, %s1479_s1 }
   0x8   :  { %p1169_p2 = pnand %p1167_p1, %p1164_p0 }
   0xa   :  { %1172 = shalt.err (!%p1169_p2)
}
   0xb   :  { %s1173_s30 = scalar_lea.vmem %s32_s22, 2048  ;;  %p1178_p4 = scmp.lt.s32.totalorder %s32_s22, %s32_s22 }
   0xc   :  { %p1174_p3 = scmp.ne.s32.totalorder %s32_s22, %s1173_s30  ;;  %p1179_p5 = scmp.lt.s32.totalorder %s1173_s30, %s1173_s30 }
   0xe   :  { %p1180_p6 = por %p1179_p5, %p1178_p4 }
  0x10   :  { %p1181_p7 = pnand %p1180_p6, %p1174_p3 }
  0x12   :  { %1184 = shalt.err (!%p1181_p7)
}
  0x13   :  { %s1328_s7 = smov 64   ;;  %s1329_s8 = smov 4  }
  0x14   :  { %37 = dma.hbm_to_vmem [thread:$0]  %s1479_s1, 2048, %s32_s22, [#allocation6], %s1328_s7, %s1328_s7, %s1329_s8  }
  0x15   :  { %s1330_s11 = smov [#allocation8]   ;;  %s1331_s13 = smov [#allocation2]  }
  0x16   :  { %s53_s12 = sshll.u32 %s1330_s11, 4  ;;  %s22_s14 = sshll.u32 %s1331_s13, 4  ;;  %s54_s12 = int_to_ptr.vmem [resolvable:$true] %s53_s12  ;;  %s23_s14 = int_to_ptr.vmem [resolvable:$true] %s22_s14 }
  0x17   :  { %s1185_s17 = scalar_lea.hbm %s1481_s3, 2048 }
  0x18   :  { %p1186_p8 = scmp.ne.s32.totalorder %s1481_s3, %s1185_s17  ;;  %p1189_p9 = scmp.lt.u32.totalorder %s1185_s17, %s1481_s3 }
  0x1a   :  { %p1191_p10 = pnand %p1189_p9, %p1186_p8 }
  0x1c   :  { %1194 = shalt.err (!%p1191_p10)
}
  0x1d   :  { %s1195_s1 = scalar_lea.vmem %s54_s12, 2048  ;;  %p1200_p12 = scmp.lt.s32.totalorder %s54_s12, %s54_s12 }
  0x1e   :  { %p1196_p11 = scmp.ne.s32.totalorder %s54_s12, %s1195_s1  ;;  %p1201_p13 = scmp.lt.s32.totalorder %s1195_s1, %s1195_s1 }
  0x20   :  { %p1202_p0 = por %p1201_p13, %p1200_p12 }
  0x22   :  { %p1203_p1 = pnand %p1202_p0, %p1196_p11 }
  0x24   :  { %1206 = shalt.err (!%p1203_p1)
}
  0x25   :  { %59 = dma.hbm_to_vmem [thread:$0]  %s1481_s3, 2048, %s54_s12, [#allocation9], %s1328_s7, %s1328_s7, %s1329_s8  }
  0x26   :  { %s1207_s26 = scalar_lea.hbm %s1478_s0, 128 }
  0x27   :  { %p1208_p2 = scmp.ne.s32.totalorder %s1478_s0, %s1207_s26  ;;  %p1211_p3 = scmp.lt.u32.totalorder %s1207_s26, %s1478_s0 }
  0x29   :  { %p1213_p4 = pnand %p1211_p3, %p1208_p2 }
  0x2b   :  { %1216 = shalt.err (!%p1213_p4)
}
  0x2c   :  { %s1217_s9 = scalar_lea.vmem %s23_s14, 128  ;;  %p1222_p6 = scmp.lt.s32.totalorder %s23_s14, %s23_s14 }
  0x2d   :  { %p1218_p5 = scmp.ne.s32.totalorder %s23_s14, %s1217_s9  ;;  %p1223_p7 = scmp.lt.s32.totalorder %s1217_s9, %s1217_s9 }
  0x2f   :  { %p1224_p8 = por %p1223_p7, %p1222_p6 }
  0x31   :  { %p1225_p9 = pnand %p1224_p8, %p1218_p5 }
  0x33   :  { %1228 = shalt.err (!%p1225_p9)
}
  0x34   :  { %25 = dma.hbm_to_vmem [thread:$0]  %s1478_s0, 128, %s23_s14, [#allocation3]  }
  0x35   :  { %s1332_s8 = smov [#allocation7]   ;;  %s1333_s11 = smov [#allocation10]  }
  0x36   :  { %s44_s10 = sshll.u32 %s1332_s8, 4  ;;  %s65_s12 = sshll.u32 %s1333_s11, 4  ;;  %s45_s10 = int_to_ptr.vmem [resolvable:$true] %s44_s10  ;;  %s66_s12 = int_to_ptr.vmem [resolvable:$true] %s65_s12 }
  0x37   :  { %s1229_s16 = scalar_lea.hbm %s1480_s2, 16 }
  0x38   :  { %p1230_p10 = scmp.ne.s32.totalorder %s1480_s2, %s1229_s16  ;;  %p1233_p11 = scmp.lt.u32.totalorder %s1229_s16, %s1480_s2 }
  0x3a   :  { %p1235_p12 = pnand %p1233_p11, %p1230_p10 }
  0x3c   :  { %1238 = shalt.err (!%p1235_p12)
}
  0x3d   :  { %s1239_s0 = scalar_lea.vmem %s45_s10, 16  ;;  %s1243_s14 = scalar_lea.vmem %s45_s10, 32 }
  0x3e   :  { %p1240_p13 = scmp.ne.s32.totalorder %s45_s10, %s1239_s0  ;;  %p1244_p0 = scmp.lt.s32.totalorder %s45_s10, %s45_s10 }
  0x3f   :  { %p1245_p1 = scmp.lt.s32.totalorder %s1243_s14, %s1239_s0 }
  0x41   :  { %p1246_p2 = por %p1245_p1, %p1244_p0 }
  0x43   :  { %p1247_p3 = pnand %p1246_p2, %p1240_p13 }
  0x45   :  { %1250 = shalt.err (!%p1247_p3)
}
  0x46   :  { %47 = dma.hbm_to_vmem [thread:$0]  %s1480_s2, 16, %s45_s10, [#allocation6]  }
  0x47   :  { %s1251_s24 = scalar_lea.hbm %s1482_s4, 4096 }
  0x48   :  { %p1252_p4 = scmp.ne.s32.totalorder %s1482_s4, %s1251_s24  ;;  %p1255_p5 = scmp.lt.u32.totalorder %s1251_s24, %s1482_s4 }
  0x4a   :  { %p1257_p6 = pnand %p1255_p5, %p1252_p4 }
  0x4c   :  { %1260 = shalt.err (!%p1257_p6)
}
  0x4d   :  { %s1261_s29 = scalar_lea.vmem %s66_s12, 4096  ;;  %p1266_p8 = scmp.lt.s32.totalorder %s66_s12, %s66_s12 }
  0x4e   :  { %p1262_p7 = scmp.ne.s32.totalorder %s66_s12, %s1261_s29  ;;  %p1267_p9 = scmp.lt.s32.totalorder %s1261_s29, %s1261_s29 }
  0x50   :  { %p1268_p10 = por %p1267_p9, %p1266_p8 }
  0x52   :  { %p1269_p11 = pnand %p1268_p10, %p1262_p7 }
  0x54   :  { %1272 = shalt.err (!%p1269_p11)
}
  0x55   :  { %s1334_s2 = smov 128   ;;  %s1335_s30 = smov 8  }
  0x56   :  { %71 = dma.hbm_to_vmem [thread:$0]  %s1482_s4, 4096, %s66_s12, [#allocation9], %s1334_s2, %s1334_s2, %s1335_s30  }
  0x57   :  { %s1336_s7 = smov [#allocation11]   ;;  %s1273_s13 = scalar_lea.hbm %s1483_s5, 32 }
  0x58   :  { %s78_s8 = sshll.u32 %s1336_s7, 4  ;;  %p1274_p12 = scmp.ne.s32.totalorder %s1483_s5, %s1273_s13  ;;  %s79_s8 = int_to_ptr.vmem [resolvable:$true] %s78_s8 }
  0x59   :  { %p1277_p13 = scmp.lt.u32.totalorder %s1273_s13, %s1483_s5 }
  0x5b   :  { %p1279_p0 = pnand %p1277_p13, %p1274_p12 }
  0x5d   :  { %1282 = shalt.err (!%p1279_p0)
}
  0x5e   :  { %s1283_s19 = scalar_lea.vmem %s79_s8, 32  ;;  %p1288_p2 = scmp.lt.s32.totalorder %s79_s8, %s79_s8 }
  0x5f   :  { %p1284_p1 = scmp.ne.s32.totalorder %s79_s8, %s1283_s19  ;;  %p1289_p3 = scmp.lt.s32.totalorder %s1283_s19, %s1283_s19 }
  0x61   :  { %p1290_p4 = por %p1289_p3, %p1288_p2 }
  0x63   :  { %p1291_p5 = pnand %p1290_p4, %p1284_p1 }
  0x65   :  { %1294 = shalt.err (!%p1291_p5)
}
  0x66   :  { %81 = dma.hbm_to_vmem [thread:$0]  %s1483_s5, 32, %s79_s8, [#allocation12]  }
  0x67   :  { %1317 = dma.done.wait [#allocation3], 128  }
  0x68   :  { %1318 = vsyncadd [#allocation3], 4294967168 }
  0x69   :  { %1319 = dma.done.wait [#allocation6], 2064  }
  0x6a   :  { %1320 = vsyncadd [#allocation6], 4294965232 }
  0x6b   :  { %1321 = dma.done.wait [#allocation9], 6144  }
  0x6c   :  { %1322 = vsyncadd [#allocation9], 4294961152 }
  0x6d   :  { %1323 = dma.done.wait [#allocation12], 32  }
  0x6e   :  { %1324 = vsyncadd [#allocation12], 4294967264  ;;  %v1109_v0 = vld [vmem:[#allocation10 + $0x4] ss:$8 sps:$4 sm:$0xff]   ;;  %v1111_v1 = vld [vmem:[#allocation10] ss:$8 sps:$4 sm:$0xff]  }
  0x6f   :  { %314 = vmatprep.subr.bf16.mxu0 %v1109_v0  ;;  %v1112_v2 = vld [vmem:[#allocation10 + $0x14] ss:$8 sps:$4 sm:$0xff]   ;;  %v1114_v3 = vld [vmem:[#allocation10 + $0x10] ss:$8 sps:$4 sm:$0xff]   ;;  %v1115_v4 = vld [vmem:[#allocation10 + $0x24] ss:$8 sps:$4 sm:$0xff]  }
  0x70   :  { %315 = vmatpush1.bf16.msra.mxu0 %v1111_v1  ;;  %v1117_v5 = vld [vmem:[#allocation10 + $0x20] ss:$8 sps:$4 sm:$0xff]   ;;  %v1118_v6 = vld [vmem:[#allocation10 + $0x34] ss:$8 sps:$4 sm:$0xff]   ;;  %v1120_v7 = vld [vmem:[#allocation10 + $0x30] ss:$8 sps:$4 sm:$0xff]  }
  0x71   :  { %316 = vmatprep.subr.bf16.mxu0 %v1112_v2  ;;  %v1121_v8 = vld [vmem:[#allocation10 + $0x44] ss:$8 sps:$4 sm:$0xff]   ;;  %v1123_v9 = vld [vmem:[#allocation10 + $0x40] ss:$8 sps:$4 sm:$0xff]   ;;  %v1124_v10 = vld [vmem:[#allocation10 + $0x54] ss:$8 sps:$4 sm:$0xff]  }
  0x72   :  { %v1126_v11 = vld [vmem:[#allocation10 + $0x50] ss:$8 sps:$4 sm:$0xff]   ;;  %v1127_v12 = vld [vmem:[#allocation10 + $0x64] ss:$8 sps:$4 sm:$0xff]   ;;  %v1129_v18 = vld [vmem:[#allocation10 + $0x60] ss:$8 sps:$4 sm:$0xff]  }
  0x73   :  { %v1448_v13 = vld [vmem:[#allocation2] sm:$0xff]  ;;  %v939_v14 = vld [vmem:[#allocation5 + $0x40] sm:$0xff]   ;;  %v940_v17 = vld [vmem:[#allocation5 + $0x48] sm:$0xff]   ;;  %vm359_vm0 = vcmask 1043456   ;;  %v1337_v46 = vmov 0   ;;  %vm355_vm1 = vcmask 64512  }
  0x74   :  { %317 = vmatpush1.bf16.msra.mxu0 %v1114_v3  ;;  %v1452_v15 = vcombine.high %v1448_v13, %v1448_v13  ;;  %1032 = vmatprep.subr.bf16.mxu1 %v939_v14  ;;  %v805_v16 = vld [vmem:[#allocation5] sm:$0xff]   ;;  %v932_v20 = vld [vmem:[#allocation5 + $0x8] sm:$0xff]   ;;  %v941_v21 = vld [vmem:[#allocation5 + $0x50] sm:$0xff]   ;;  %v768_v44 = vcombine.low %v1448_v13, %v1448_v13  ;;  %v1338_v47 = vmov 1065369472   ;;  %s1340_s5 = smov [#allocation13]  }
  0x75   :  { %318 = vmatprep.subr.bf16.mxu0 %v1115_v4  ;;  %1034 = vmatpush3.bf16.msra.mxu1 %v805_v16  ;;  %v1130_v19 = vld [vmem:[#allocation10 + $0x74] ss:$8 sps:$4 sm:$0xff]   ;;  %v1132_v22 = vld [vmem:[#allocation10 + $0x70] ss:$8 sps:$4 sm:$0xff]   ;;  %v1133_v23 = vld [vmem:[#allocation10 + $0x84] ss:$8 sps:$4 sm:$0xff]  }
  0x76   :  { %346 = vmatprep.mubr.bf16.mxu0 %v1452_v15  ;;  %1036 = vmatprep.subr.bf16.mxu1 %v940_v17  ;;  %v933_v24 = vld [vmem:[#allocation5 + $0x10] sm:$0xff]   ;;  %v942_v25 = vld [vmem:[#allocation5 + $0x58] sm:$0xff]   ;;  %v1135_v26 = vld [vmem:[#allocation10 + $0x80] ss:$8 sps:$4 sm:$0xff]   ;;  %v361_v45 = vsel %vm359_vm0, %v768_v44, 0  ;;  %s756_s20 = sshll.u32 %s1340_s5, 4  ;;  %s757_s20 = int_to_ptr.vmem [resolvable:$true] %s756_s20 }
  0x77   :  { %v1136_v27 = vld [vmem:[#allocation10 + $0x94] ss:$8 sps:$4 sm:$0xff]   ;;  %v1138_v30 = vld [vmem:[#allocation10 + $0x90] ss:$8 sps:$4 sm:$0xff]   ;;  %v1139_v31 = vld [vmem:[#allocation10 + $0xa4] ss:$8 sps:$4 sm:$0xff]   ;;  %p1300_p7 = scmp.lt.s32.totalorder %s757_s20, %s757_s20 }
  0x78   :  { %319 = vmatpush1.bf16.msra.mxu0 %v1117_v5  ;;  %v934_v28 = vld [vmem:[#allocation5 + $0x18] sm:$0xff]   ;;  %v943_v29 = vld [vmem:[#allocation5 + $0x60] sm:$0xff]   ;;  %v944_v48 = vld [vmem:[#allocation5 + $0x68] sm:$0xff]   ;;  %s1295_s0 = scalar_lea.vmem %s757_s20, 32 }
  0x79   :  { %320 = vmatprep.subr.bf16.mxu0 %v1118_v6  ;;  %1038 = vmatpush3.bf16.msra.mxu1 %v932_v20  ;;  %v935_v32 = vld [vmem:[#allocation5 + $0x20] sm:$0xff]   ;;  %v1144_v35 = vld [vmem:[#allocation10 + $0xb0] ss:$8 sps:$4 sm:$0xff]   ;;  %v936_v49 = vld [vmem:[#allocation5 + $0x28] sm:$0xff]   ;;  %p1296_p6 = scmp.ne.s32.totalorder %s757_s20, %s1295_s0  ;;  %p1301_p8 = scmp.lt.s32.totalorder %s1295_s0, %s1295_s0 }
  0x7a   :  { %1040 = vmatprep.subr.bf16.mxu1 %v941_v21  ;;  %v1141_v33 = vld [vmem:[#allocation10 + $0xa0] ss:$8 sps:$4 sm:$0xff]   ;;  %v1142_v34 = vld [vmem:[#allocation10 + $0xb4] ss:$8 sps:$4 sm:$0xff]   ;;  %v1145_v36 = vld [vmem:[#allocation10 + $0xc4] ss:$8 sps:$4 sm:$0xff]  }
  0x7b   :  { %v1147_v37 = vld [vmem:[#allocation10 + $0xc0] ss:$8 sps:$4 sm:$0xff]   ;;  %v1148_v38 = vld [vmem:[#allocation10 + $0xd4] ss:$8 sps:$4 sm:$0xff]   ;;  %v1150_v39 = vld [vmem:[#allocation10 + $0xd0] ss:$8 sps:$4 sm:$0xff]   ;;  %p1302_p9 = por %p1301_p8, %p1300_p7 }
  0x7c   :  { %321 = vmatpush1.bf16.msra.mxu0 %v1120_v7  ;;  %v1151_v40 = vld [vmem:[#allocation10 + $0xe4] ss:$8 sps:$4 sm:$0xff]   ;;  %v1153_v41 = vld [vmem:[#allocation10 + $0xe0] ss:$8 sps:$4 sm:$0xff]   ;;  %v1154_v42 = vld [vmem:[#allocation10 + $0xf4] ss:$8 sps:$4 sm:$0xff]  }
  0x7d   :  { %322 = vmatprep.subr.bf16.mxu0 %v1121_v8  ;;  %1042 = vmatpush3.bf16.msra.mxu1 %v933_v24  ;;  %v1156_v43 = vld [vmem:[#allocation10 + $0xf0] ss:$8 sps:$4 sm:$0xff]   ;;  %v954_v54 = vld [vmem:[#allocation8 + $0x40] sm:$0xff]   ;;  %v955_v2 = vld [vmem:[#allocation8 + $0x48] sm:$0xff]   ;;  %p1303_p10 = pnand %p1302_p9, %p1296_p6 }
  0x7e   :  { %1044 = vmatprep.subr.bf16.mxu1 %v942_v25  ;;  %v945_v50 = vld [vmem:[#allocation5 + $0x70] sm:$0xff]   ;;  %v946_v52 = vld [vmem:[#allocation5 + $0x78] sm:$0xff]   ;;  %v869_v1 = vld [vmem:[#allocation8] sm:$0xff]  }
  0x7f   :  { %v937_v51 = vld [vmem:[#allocation5 + $0x30] sm:$0xff]   ;;  %v938_v53 = vld [vmem:[#allocation5 + $0x38] sm:$0xff]   ;;  %v958_v8 = vld [vmem:[#allocation8 + $0x60] sm:$0xff]  }
  0x80   :  { %323 = vmatpush1.bf16.msra.mxu0 %v1123_v9  ;;  %v947_v3 = vld [vmem:[#allocation8 + $0x8] sm:$0xff]   ;;  %v956_v4 = vld [vmem:[#allocation8 + $0x50] sm:$0xff]   ;;  %v957_v6 = vld [vmem:[#allocation8 + $0x58] sm:$0xff]  }
  0x81   :  { %324 = vmatprep.subr.bf16.mxu0 %v1124_v10  ;;  %1046 = vmatpush3.bf16.msra.mxu1 %v934_v28  ;;  %v948_v5 = vld [vmem:[#allocation8 + $0x10] sm:$0xff]   ;;  %v949_v7 = vld [vmem:[#allocation8 + $0x18] sm:$0xff]   ;;  %v950_v9 = vld [vmem:[#allocation8 + $0x20] sm:$0xff]   ;;  %v681_v28 = vunpack.c.h.bf16 %v1448_v13 }
  0x82   :  { %1048 = vmatprep.subr.bf16.mxu1 %v943_v29  ;;  %v959_v10 = vld [vmem:[#allocation8 + $0x68] sm:$0xff]   ;;  %v952_v14 = vld [vmem:[#allocation8 + $0x30] sm:$0xff]   ;;  %v953_v16 = vld [vmem:[#allocation8 + $0x38] sm:$0xff]  }
  0x84   :  { %325 = vmatpush1.bf16.msra.mxu0 %v1126_v11  ;;  %v951_v11 = vld [vmem:[#allocation8 + $0x28] sm:$0xff]  }
  0x85   :  { %326 = vmatprep.subr.bf16.mxu0 %v1127_v12  ;;  %1050 = vmatpush3.bf16.msra.mxu1 %v935_v32  ;;  %v960_v12 = vld [vmem:[#allocation8 + $0x70] sm:$0xff]  }
  0x86   :  { %1052 = vmatprep.subr.bf16.mxu1 %v944_v48 }
  0x88   :  { %327 = vmatpush1.bf16.msra.mxu0 %v1129_v18  ;;  %v473_v18 = vld [vmem:[#allocation7] sm:$0x1] }
  0x89   :  { %328 = vmatprep.subr.bf16.mxu0 %v1130_v19  ;;  %1054 = vmatpush3.bf16.msra.mxu1 %v936_v49 }
  0x8a   :  { %1056 = vmatprep.subr.bf16.mxu1 %v945_v50 }
  0x8c   :  { %329 = vmatpush1.bf16.msra.mxu0 %v1132_v22 }
  0x8d   :  { %330 = vmatprep.subr.bf16.mxu0 %v1133_v23  ;;  %1058 = vmatpush3.bf16.msra.mxu1 %v937_v51  ;;  %v137_v23 = vlaneseq }
  0x8e   :  { %1060 = vmatprep.subr.bf16.mxu1 %v946_v52 }
  0x8f   :  { %v138_v24 = vshrl.u32 %v137_v23, 7  ;;  %vm747_vm2 = vcmp.lt.s32.totalorder %v137_v23, 256 }
  0x90   :  { %331 = vmatpush1.bf16.msra.mxu0 %v1135_v26  ;;  %v680_v26 = vunpack.c.l.bf16 %v1448_v13 }
  0x91   :  { %332 = vmatprep.subr.bf16.mxu0 %v1136_v27  ;;  %1062 = vmatpush3.bf16.msra.mxu1 %v938_v53  ;;  %v139_v25 = vsub.s32 0, %v138_v24 }
  0x92   :  { %1064 = vmatprep.subr.bf16.mxu1 %v954_v54 }
  0x94   :  { %333 = vmatpush1.bf16.msra.mxu0 %v1138_v30 }
  0x95   :  { %334 = vmatprep.subr.bf16.mxu0 %v1139_v31 }
  0x98   :  { %335 = vmatpush1.bf16.msra.mxu0 %v1141_v33 }
  0x99   :  { %336 = vmatprep.subr.bf16.mxu0 %v1142_v34 }
  0x9c   :  { %337 = vmatpush1.bf16.msra.mxu0 %v1144_v35 }
  0x9d   :  { %338 = vmatprep.subr.bf16.mxu0 %v1145_v36 }
  0xa0   :  { %339 = vmatpush1.bf16.msra.mxu0 %v1147_v37 }
  0xa1   :  { %340 = vmatprep.subr.bf16.mxu0 %v1148_v38 }
  0xa4   :  { %341 = vmatpush1.bf16.msra.mxu0 %v1150_v39 }
  0xa5   :  { %342 = vmatprep.subr.bf16.mxu0 %v1151_v40 }
  0xa8   :  { %343 = vmatpush1.bf16.msra.mxu0 %v1153_v41 }
  0xa9   :  { %344 = vmatprep.subr.bf16.mxu0 %v1154_v42 }
  0xac   :  { %345 = vmatpush1.bf16.msra.mxu0 %v1156_v43 }
  0xad   :  { %802 = vmatprep.subr.msk.bf16.mxu0 %vm359_vm0, %v1452_v15  ;;  %v961_v15 = vld [vmem:[#allocation8 + $0x78] sm:$0xff]  }
  0xaf   :  { %347 = vmatmul.mubr.bf16.vlgmr.msra.gmra.mrb[0].mxu0 %v768_v44  ;;  %v143_v44 = vsub.s32 1, %v138_v24 }
  0xb0   :  { %367 = vmatpush1.bf16.msra.mxu0 %v361_v45  ;;  %398 = vmatprep.mubr.bf16.mxu0 %v1337_v46  ;;  %v135_v45 = vld [vmem:[#allocation11] sm:$0x3] }
  0xb1   :  { %v140_v13 = vrot.slane %v135_v45, %v139_v25  ;;  %v144_v46 = vrot.slane %v135_v45, %v143_v44 }
  0xb7   :  { %803 = vmatmul.mubr.msk.bf16.vlgmr.msra.gmra.mrb[4].mxu0 %vm355_vm1, %v1338_v47 }
 0x182   :  { %v1458_v55 = vpop.f32.mrb[0].mxu0 }
 0x183   :  { %v1460_v56 = vpop.f32.mrb[1].mxu0  ;;  %v349_v47 = vadd.f32 %v1458_v55, %v140_v13 }
 0x184   :  { %v352_v57 = vpop.f32.mrb[2].mxu0  ;;  %v351_v48 = vadd.f32 %v1460_v56, %v144_v46 }
 0x185   :  { %v353_v58 = vpop.f32.mrb[3].mxu0 }
 0x18a   :  { %v400_v59 = vpop.f32.mrb[4].mxu0 }
 0x18b   :  { %v402_v60 = vpop.f32.mrb[5].mxu0  ;;  %v407_v63 = vmul.f32 0.125, %v400_v59 }
 0x18c   :  { %v404_v61 = vpop.f32.mrb[6].mxu0  ;;  %v408_v62 = vmul.f32 0.125, %v402_v60 }
 0x18d   :  { %v405_v0 = vpop.f32.mrb[7].mxu0 }
 0x18e   :  { %538 = vmatprep.mubr.f32.mxu1 %v408_v62 }
 0x18f   :  { %539 = vmatmul.mubr.f32.vlgmr.msra.gmra.mrb[0].mxu1 %v407_v63 }
 0x190   :  { %1066 = vmatpush3.bf16.xpose.msra.mxu1 %v869_v1 }
 0x191   :  { %1068 = vmatprep.subr.bf16.mxu1 %v955_v2 }
 0x198   :  { %1070 = vmatpush3.bf16.xpose.msra.mxu1 %v947_v3  ;;  %v1339_v3 = vmov 1966171168  }
 0x199   :  { %1072 = vmatprep.subr.bf16.mxu1 %v956_v4  ;;  %v731_v56 = vunpack.c.l.s4 %v1339_v3 }
 0x1a0   :  { %1074 = vmatpush3.bf16.xpose.msra.mxu1 %v948_v5 }
 0x1a1   :  { %1076 = vmatprep.subr.bf16.mxu1 %v957_v6  ;;  %v732_v6 = vunpack.c.0.s8 %v731_v56 }
 0x1a8   :  { %1078 = vmatpush3.bf16.xpose.msra.mxu1 %v949_v7 }
 0x1a9   :  { %1080 = vmatprep.subr.bf16.mxu1 %v958_v8 }
 0x1b0   :  { %1082 = vmatpush3.bf16.xpose.msra.mxu1 %v950_v9 }
 0x1b1   :  { %1084 = vmatprep.subr.bf16.mxu1 %v959_v10 }
 0x1b8   :  { %1086 = vmatpush3.bf16.xpose.msra.mxu1 %v951_v11 }
 0x1b9   :  { %1088 = vmatprep.subr.bf16.mxu1 %v960_v12  ;;  %v735_v12 = vsub.s32 %v732_v6, %v138_v24 }
 0x1c0   :  { %1090 = vmatpush3.bf16.xpose.msra.mxu1 %v952_v14 }
 0x1c1   :  { %1092 = vmatprep.subr.bf16.mxu1 %v961_v15 }
 0x1c8   :  { %1094 = vmatpush3.bf16.xpose.msra.mxu1 %v953_v16 }
 0x262   :  { %v994_v17 = vpop.f32.mrb[0].mxu1 }
 0x263   :  { %v995_v19 = vpop.f32.mrb[1].mxu1 }
 0x264   :  { %v996_v20 = vadd.f32 %v995_v19, %v994_v17 }
 0x266   :  { %v541_v21 = vadd.f32 %v996_v20, %v473_v18 }
 0x268   :  { %v544_v22 = vmul.f32 0.088388346, %v541_v21 }
 0x26a   :  { %1029 = vmatprep.mubr.f32.mxu1 %v544_v22 }
 0x26b   :  { %1030 = vmatmul.mubr.f32.vlgmr.msra.gmra.mrb[2].mxu1 %v544_v22 }
 0x33e   :  { %v675_v27 = vpop.f32.mrb[2].mxu1 }
 0x33f   :  { %v685_v29 = vrot.slane %v675_v27, %v139_v25  ;;  %v677_v30 = vpop.f32.mrb[3].mxu1 }
 0x340   :  { %v689_v31 = vrot.slane %v677_v30, %v139_v25 }
 0x341   :  { %v690_v32 = vmul.f32 %v685_v29, %v680_v26 }
 0x342   :  { %v691_v33 = vmul.f32 %v689_v31, %v681_v28 }
 0x344   :  { %v692_v34 = vadd.f32 %v691_v33, %v690_v32 }
 0x346   :  { %693 = vadd.xlane.f32.xlu0 %v692_v34 }
 0x3d3   :  { %v694_v35 = vpop.xlane.xlu0 %693 }
 0x3d4   :  { %v695_v36 = vrot.slane %v694_v35, 4 }
 0x3d6   :  { %v696_v37 = vmax.f32 %v694_v35, %v695_v36 }
 0x3d8   :  { %v697_v38 = vrot.slane %v696_v37, 2 }
 0x3da   :  { %v698_v39 = vmax.f32 %v696_v37, %v697_v38 }
 0x3dc   :  { %v699_v40 = vrot.slane %v698_v39, 1 }
 0x3de   :  { %v700_v41 = vmax.f32 %v698_v39, %v699_v40 }
 0x3e0   :  { %v701_v42 = vsub.f32 %v694_v35, %v700_v41 }
 0x3e2   :  { %v702_v43 = vmul.f32 1.442695, %v701_v42 }
 0x3e4   :  { %1159 = vpow2.f32 %v702_v43 }
 0x3ee   :  { %v1160_v49 = vpop.eup %1159 }
 0x3ef   :  { %v704_v50 = vrot.slane %v1160_v49, 4  ;;  %v710_v51 = vmul.f32 %v1160_v49, %v349_v47  ;;  %v711_v52 = vmul.f32 %v1160_v49, %v351_v48 }
 0x3f1   :  { %v705_v53 = vadd.f32 %v1160_v49, %v704_v50  ;;  %v712_v54 = vrot.slane %v710_v51, 4  ;;  %v718_v57 = vrot.slane %v711_v52, 4 }
 0x3f3   :  { %v706_v58 = vrot.slane %v705_v53, 2  ;;  %v713_v59 = vadd.f32 %v712_v54, %v710_v51  ;;  %v719_v60 = vadd.f32 %v718_v57, %v711_v52 }
 0x3f5   :  { %v707_v61 = vadd.f32 %v706_v58, %v705_v53  ;;  %v714_v63 = vrot.slane %v713_v59, 2  ;;  %v720_v0 = vrot.slane %v719_v60, 2 }
 0x3f7   :  { %v708_v62 = vrot.slane %v707_v61, 1  ;;  %v715_v2 = vadd.f32 %v714_v63, %v713_v59  ;;  %v721_v55 = vadd.f32 %v720_v0, %v719_v60 }
 0x3f9   :  { %v709_v1 = vadd.f32 %v708_v62, %v707_v61  ;;  %v716_v4 = vrot.slane %v715_v2, 1  ;;  %v722_v5 = vrot.slane %v721_v55, 1 }
 0x3fb   :  { %1161 = vrcp.f32 %v709_v1  ;;  %v717_v7 = vadd.f32 %v716_v4, %v715_v2  ;;  %v723_v8 = vadd.f32 %v722_v5, %v721_v55 }
 0x405   :  { %v1162_v9 = vpop.eup %1161 }
 0x406   :  { %v725_v10 = vmul.f32 %v1162_v9, %v717_v7  ;;  %v726_v11 = vmul.f32 %v1162_v9, %v723_v8 }
 0x408   :  { %v729_v14 = vcombine.low %v725_v10, %v726_v11 }
 0x40a   :  { %v736_v15 = vrot.slane %v729_v14, %v735_v12 }
 0x40c   :  { %v743_v16 = vrot.slane %v736_v15, %v735_v12 }
 0x40e   :  { %749 = vst.msk [vmem:[#allocation13] sm:$0x3] %vm747_vm2, %v743_v16 }
 0x40f   :  { %1306 = shalt.err (!%p1303_p10)
}
 0x410   :  { %s1307_s1 = scalar_lea.hbm %s1484_s6, 32 }
 0x411   :  { %p1308_p11 = scmp.ne.s32.totalorder %s1484_s6, %s1307_s1  ;;  %p1311_p12 = scmp.lt.u32.totalorder %s1307_s1, %s1484_s6 }
 0x413   :  { %p1313_p13 = pnand %p1311_p12, %p1308_p11 }
 0x415   :  { %1316 = shalt.err (!%p1313_p13)
}
 0x416   :  { %759 = dma.vmem_to_hbm [thread:$0]  %s757_s20, 32, %s1484_s6, [#allocation4]  }
 0x417   :  { %1325 = dma.done.wait [#allocation4], 32  }
 0x418   :  { %1326 = vsyncadd [#allocation4], 4294967264 }
 0x419   :  { %763 = vsyncpa [#allocation3], 1 }
 0x41a   :  { %764 = vsyncpa [#allocation6], 1 }
 0x41b   :  { %765 = vsyncpa [#allocation9], 1 }
 0x41c   :  { %766 = vsyncpa [#allocation12], 1 }
 0x41d   :  { %767 = vsyncpa [#allocation4], 1 }

</bundles_post_ra>
